<compile_context>
chip_gen: v6e
topology: v6e:2x2x1
jax: 0.10.0
libtpu: 0.0.40
codegen_flags: <defaults>
</compile_context>

<pallas_src>
import functools

import jax
import jax.numpy as jnp
from jax.experimental import pallas as pl
from jax.experimental.pallas import tpu as pltpu


def _gru_recurrence_kernel(gi_r_ref, gi_z_ref, gi_n_ref,
                           w_hr_ref, w_hz_ref, w_hn_ref, b_hn_ref,
                           out_ref):
    """Serial GRU recurrence.

    gi_* : (T, B, H) time-major precomputed input projections (input biases,
           and the hidden biases for r/z, already folded in).
    w_h* : (H, H) pre-transposed hidden weights (ready for (B,H) @ (H,H)).
    b_hn : (1, H) hidden bias of the n gate (kept separate: multiplied by r).
    out  : (B, T, H) batch-first output, written directly in final layout.
    """
    T, B, H = gi_r_ref.shape

    # Load weights into registers once; they are reused every step.
    w_hr = w_hr_ref[...]                      # (H, H)
    w_hz = w_hz_ref[...]                      # (H, H)
    w_hn = w_hn_ref[...]                      # (H, H)
    b_hn = b_hn_ref[...]                      # (1, H)

    h = jnp.zeros((B, H), jnp.float32)        # h0 = 0 (PyTorch default)

    # T is small and static: straight-line unrolled recurrence. Only the three
    # (B,H)@(H,H) hidden matmuls + gate math sit on the serial dependency
    # chain; gi loads and output stores are independent of h and get hidden
    # by the scheduler.
    for t in range(T):
        gh_r = jnp.dot(h, w_hr, preferred_element_type=jnp.float32)
        gh_z = jnp.dot(h, w_hz, preferred_element_type=jnp.float32)
        gh_n = jnp.dot(h, w_hn, preferred_element_type=jnp.float32) + b_hn
        r = jax.nn.sigmoid(gi_r_ref[t] + gh_r)
        z = jax.nn.sigmoid(gi_z_ref[t] + gh_z)
        n = jnp.tanh(gi_n_ref[t] + r * gh_n)
        h = n + z * (h - n)                   # == (1 - z) * n + z * h
        out_ref[:, t, :] = h.astype(out_ref.dtype)


@functools.partial(jax.jit, static_argnames=())
def gru_forward(x, w_ih, w_hh, b_ih, b_hh):
    """x: [B, T, I] (batch_first). Weights in PyTorch layout:
       w_ih: (3H, I), w_hh: (3H, H), b_ih/b_hh: (3H,). Returns [B, T, H]."""
    B, T, I = x.shape
    H = w_hh.shape[1]

    x = x.astype(jnp.float32)
    w_ih = jnp.asarray(w_ih, jnp.float32)
    w_hh = jnp.asarray(w_hh, jnp.float32)
    b_ih = jnp.asarray(b_ih, jnp.float32)
    b_hh = jnp.asarray(b_hh, jnp.float32)

    # Fold the hidden bias into the input bias for the r/z gates; b_hn must
    # stay separate because it is multiplied by r inside the n gate.
    b_fold = jnp.concatenate([b_ih[:2 * H] + b_hh[:2 * H], b_ih[2 * H:]])

    # Input projection for ALL timesteps in one batched matmul (XLA), emitted
    # time-major so the kernel's per-step read is a leading-axis tile select.
    gi = jnp.einsum('bti,gi->tbg', x, w_ih) + b_fold            # (T, B, 3H)
    gi_r = gi[..., 0:H]
    gi_z = gi[..., H:2 * H]
    gi_n = gi[..., 2 * H:3 * H]

    # Hidden weights as three (H, H) blocks, pre-transposed for (B,H)@(H,H).
    w_hr_t = w_hh[0:H].T
    w_hz_t = w_hh[H:2 * H].T
    w_hn_t = w_hh[2 * H:3 * H].T
    b_hn = b_hh[2 * H:3 * H].reshape(1, H)

    # Everything fits comfortably in VMEM at these shapes -> no grid / tiling;
    # one invocation, one output write-back.
    vmem = pl.BlockSpec(memory_space=pltpu.MemorySpace.VMEM)
    out = pl.pallas_call(
        _gru_recurrence_kernel,
        out_shape=jax.ShapeDtypeStruct((B, T, H), jnp.float32),
        in_specs=[vmem] * 7,
        out_specs=vmem,
    )(gi_r, gi_z, gi_n, w_hr_t, w_hz_t, w_hn_t, b_hn)
    return out


def gru_forward_ref(x, w_ih, w_hh, b_ih, b_hh):
    """Pure-JAX reference mirroring torch.nn.GRU (single layer, unidirectional)."""
    B, T, I = x.shape
    H = w_hh.shape[1]
    h = jnp.zeros((B, H), jnp.float32)
    outs = []
    for t in range(T):
        x_t = x[:, t, :].astype(jnp.float32)
        gi = x_t @ w_ih.T + b_ih
        gh = h @ w_hh.T + b_hh
        r = jax.nn.sigmoid(gi[:, :H] + gh[:, :H])
        z = jax.nn.sigmoid(gi[:, H:2 * H] + gh[:, H:2 * H])
        n = jnp.tanh(gi[:, 2 * H:] + r * gh[:, 2 * H:])
        h = (1.0 - z) * n + z * h
        outs.append(h)
    return jnp.stack(outs, axis=1)


if __name__ == "__main__":
    # Small shapes: batch=2, seq=8, input_size=16, hidden_size=32
    B, T, I, H = 2, 8, 16, 32

    key = jax.random.PRNGKey(0)
    k_x, k_wi, k_wh, k_bi, k_bh = jax.random.split(key, 5)

    # Deterministic parameter init (uniform(-1/sqrt(H), 1/sqrt(H)), PyTorch-style).
    bound = 1.0 / jnp.sqrt(jnp.float32(H))
    w_ih = jax.random.uniform(k_wi, (3 * H, I), jnp.float32, -bound, bound)
    w_hh = jax.random.uniform(k_wh, (3 * H, H), jnp.float32, -bound, bound)
    b_ih = jax.random.uniform(k_bi, (3 * H,), jnp.float32, -bound, bound)
    b_hh = jax.random.uniform(k_bh, (3 * H,), jnp.float32, -bound, bound)

    x = jax.random.normal(k_x, (B, T, I), jnp.float32)

    out = gru_forward(x, w_ih, w_hh, b_ih, b_hh)
    out = jax.block_until_ready(out)

    ref = gru_forward_ref(x, w_ih, w_hh, b_ih, b_hh)
    assert out.shape == (B, T, H)
    assert jnp.allclose(out, ref, atol=1e-5, rtol=1e-5), "mismatch vs reference GRU"

    print("KERNEL_OK")
</pallas_src>

<mosaic_0001>
module attributes {stable_mosaic.version = 11 : i64} {
  func.func @_gru_recurrence_kernel(%arg0: memref<8x2x32xf32, #tpu.memory_space<vmem>>, %arg1: memref<8x2x32xf32, #tpu.memory_space<vmem>>, %arg2: memref<8x2x32xf32, #tpu.memory_space<vmem>>, %arg3: memref<32x32xf32, #tpu.memory_space<vmem>>, %arg4: memref<32x32xf32, #tpu.memory_space<vmem>>, %arg5: memref<32x32xf32, #tpu.memory_space<vmem>>, %arg6: memref<1x32xf32, #tpu.memory_space<vmem>>, %arg7: memref<2x8x32xf32, #tpu.memory_space<vmem>>) attributes {dimension_semantics = [], scalar_prefetch = 0 : i64, scratch_operands = 0 : i64, tpu.core_type = #tpu.core_type<tc>} {
    %c0 = arith.constant 0 : index
    %c0_0 = arith.constant 0 : index
    %0 = vector.load %arg3[%c0, %c0_0] : memref<32x32xf32, #tpu.memory_space<vmem>>, vector<32x32xf32>
    %c0_1 = arith.constant 0 : index
    %c0_2 = arith.constant 0 : index
    %1 = vector.load %arg4[%c0_1, %c0_2] : memref<32x32xf32, #tpu.memory_space<vmem>>, vector<32x32xf32>
    %c0_3 = arith.constant 0 : index
    %c0_4 = arith.constant 0 : index
    %2 = vector.load %arg5[%c0_3, %c0_4] : memref<32x32xf32, #tpu.memory_space<vmem>>, vector<32x32xf32>
    %c0_5 = arith.constant 0 : index
    %c0_6 = arith.constant 0 : index
    %3 = vector.load %arg6[%c0_5, %c0_6] : memref<1x32xf32, #tpu.memory_space<vmem>>, vector<1x32xf32>
    %cst = arith.constant 0.000000e+00 : f32
    %4 = vector.broadcast %cst : f32 to vector<2x32xf32>
    %cst_7 = arith.constant dense<0.000000e+00> : vector<2x32xf32>
    %5 = tpu.matmul %4, %0, %cst_7 {dimension_numbers = #tpu.dot_dimension_numbers<[1], [0], [0], [1], [0, 0, 1, 1], [], []>} : vector<2x32xf32>, vector<32x32xf32>, vector<2x32xf32> -> vector<2x32xf32>
    %cst_8 = arith.constant dense<0.000000e+00> : vector<2x32xf32>
    %6 = tpu.matmul %4, %1, %cst_8 {dimension_numbers = #tpu.dot_dimension_numbers<[1], [0], [0], [1], [0, 0, 1, 1], [], []>} : vector<2x32xf32>, vector<32x32xf32>, vector<2x32xf32> -> vector<2x32xf32>
    %cst_9 = arith.constant dense<0.000000e+00> : vector<2x32xf32>
    %7 = tpu.matmul %4, %2, %cst_9 {dimension_numbers = #tpu.dot_dimension_numbers<[1], [0], [0], [1], [0, 0, 1, 1], [], []>} : vector<2x32xf32>, vector<32x32xf32>, vector<2x32xf32> -> vector<2x32xf32>
    %8 = vector.broadcast %3 : vector<1x32xf32> to vector<2x32xf32>
    %9 = arith.addf %7, %8 : vector<2x32xf32>
    %c0_10 = arith.constant 0 : index
    %c0_11 = arith.constant 0 : index
    %c0_12 = arith.constant 0 : index
    %10 = vector.load %arg0[%c0_10, %c0_11, %c0_12] : memref<8x2x32xf32, #tpu.memory_space<vmem>>, vector<1x2x32xf32>
    %11 = vector.shape_cast %10 : vector<1x2x32xf32> to vector<2x32xf32>
    %12 = arith.addf %11, %5 : vector<2x32xf32>
    %13 = arith.negf %12 : vector<2x32xf32>
    %14 = math.exp %13 : vector<2x32xf32>
    %cst_13 = arith.constant 1.000000e+00 : f32
    %15 = vector.broadcast %cst_13 : f32 to vector<2x32xf32>
    %16 = arith.addf %15, %14 : vector<2x32xf32>
    %17 = arith.divf %15, %16 : vector<2x32xf32>
    %c0_14 = arith.constant 0 : index
    %c0_15 = arith.constant 0 : index
    %c0_16 = arith.constant 0 : index
    %18 = vector.load %arg1[%c0_14, %c0_15, %c0_16] : memref<8x2x32xf32, #tpu.memory_space<vmem>>, vector<1x2x32xf32>
    %19 = vector.shape_cast %18 : vector<1x2x32xf32> to vector<2x32xf32>
    %20 = arith.addf %19, %6 : vector<2x32xf32>
    %21 = arith.negf %20 : vector<2x32xf32>
    %22 = math.exp %21 : vector<2x32xf32>
    %cst_17 = arith.constant 1.000000e+00 : f32
    %23 = vector.broadcast %cst_17 : f32 to vector<2x32xf32>
    %24 = arith.addf %23, %22 : vector<2x32xf32>
    %25 = arith.divf %23, %24 : vector<2x32xf32>
    %c0_18 = arith.constant 0 : index
    %c0_19 = arith.constant 0 : index
    %c0_20 = arith.constant 0 : index
    %26 = vector.load %arg2[%c0_18, %c0_19, %c0_20] : memref<8x2x32xf32, #tpu.memory_space<vmem>>, vector<1x2x32xf32>
    %27 = vector.shape_cast %26 : vector<1x2x32xf32> to vector<2x32xf32>
    %28 = arith.mulf %17, %9 : vector<2x32xf32>
    %29 = arith.addf %27, %28 : vector<2x32xf32>
    %30 = math.tanh %29 : vector<2x32xf32>
    %31 = arith.subf %4, %30 : vector<2x32xf32>
    %32 = arith.mulf %25, %31 : vector<2x32xf32>
    %33 = arith.addf %30, %32 : vector<2x32xf32>
    %c0_21 = arith.constant 0 : index
    %c0_22 = arith.constant 0 : index
    %c0_23 = arith.constant 0 : index
    %34 = vector.load %arg7[%c0_21, %c0_22, %c0_23] : memref<2x8x32xf32, #tpu.memory_space<vmem>>, vector<2x1x32xf32>
    %35 = vector.shape_cast %34 : vector<2x1x32xf32> to vector<2x32xf32>
    %36 = vector.shape_cast %33 : vector<2x32xf32> to vector<2x1x32xf32>
    tpu.vector_store %arg7[%c0_21, %c0_22, %c0_23], %36 {strides = array<i32>} : memref<2x8x32xf32, #tpu.memory_space<vmem>>, vector<2x1x32xf32>,
    %cst_24 = arith.constant dense<0.000000e+00> : vector<2x32xf32>
    %37 = tpu.matmul %33, %0, %cst_24 {dimension_numbers = #tpu.dot_dimension_numbers<[1], [0], [0], [1], [0, 0, 1, 1], [], []>} : vector<2x32xf32>, vector<32x32xf32>, vector<2x32xf32> -> vector<2x32xf32>
    %cst_25 = arith.constant dense<0.000000e+00> : vector<2x32xf32>
    %38 = tpu.matmul %33, %1, %cst_25 {dimension_numbers = #tpu.dot_dimension_numbers<[1], [0], [0], [1], [0, 0, 1, 1], [], []>} : vector<2x32xf32>, vector<32x32xf32>, vector<2x32xf32> -> vector<2x32xf32>
    %cst_26 = arith.constant dense<0.000000e+00> : vector<2x32xf32>
    %39 = tpu.matmul %33, %2, %cst_26 {dimension_numbers = #tpu.dot_dimension_numbers<[1], [0], [0], [1], [0, 0, 1, 1], [], []>} : vector<2x32xf32>, vector<32x32xf32>, vector<2x32xf32> -> vector<2x32xf32>
    %40 = vector.broadcast %3 : vector<1x32xf32> to vector<2x32xf32>
    %41 = arith.addf %39, %40 : vector<2x32xf32>
    %c1 = arith.constant 1 : index
    %c0_27 = arith.constant 0 : index
    %c0_28 = arith.constant 0 : index
    %42 = vector.load %arg0[%c1, %c0_27, %c0_28] : memref<8x2x32xf32, #tpu.memory_space<vmem>>, vector<1x2x32xf32>
    %43 = vector.shape_cast %42 : vector<1x2x32xf32> to vector<2x32xf32>
    %44 = arith.addf %43, %37 : vector<2x32xf32>
    %45 = arith.negf %44 : vector<2x32xf32>
    %46 = math.exp %45 : vector<2x32xf32>
    %cst_29 = arith.constant 1.000000e+00 : f32
    %47 = vector.broadcast %cst_29 : f32 to vector<2x32xf32>
    %48 = arith.addf %47, %46 : vector<2x32xf32>
    %49 = arith.divf %47, %48 : vector<2x32xf32>
    %c1_30 = arith.constant 1 : index
    %c0_31 = arith.constant 0 : index
    %c0_32 = arith.constant 0 : index
    %50 = vector.load %arg1[%c1_30, %c0_31, %c0_32] : memref<8x2x32xf32, #tpu.memory_space<vmem>>, vector<1x2x32xf32>
    %51 = vector.shape_cast %50 : vector<1x2x32xf32> to vector<2x32xf32>
    %52 = arith.addf %51, %38 : vector<2x32xf32>
    %53 = arith.negf %52 : vector<2x32xf32>
    %54 = math.exp %53 : vector<2x32xf32>
    %cst_33 = arith.constant 1.000000e+00 : f32
    %55 = vector.broadcast %cst_33 : f32 to vector<2x32xf32>
    %56 = arith.addf %55, %54 : vector<2x32xf32>
    %57 = arith.divf %55, %56 : vector<2x32xf32>
    %c1_34 = arith.constant 1 : index
    %c0_35 = arith.constant 0 : index
    %c0_36 = arith.constant 0 : index
    %58 = vector.load %arg2[%c1_34, %c0_35, %c0_36] : memref<8x2x32xf32, #tpu.memory_space<vmem>>, vector<1x2x32xf32>
    %59 = vector.shape_cast %58 : vector<1x2x32xf32> to vector<2x32xf32>
    %60 = arith.mulf %49, %41 : vector<2x32xf32>
    %61 = arith.addf %59, %60 : vector<2x32xf32>
    %62 = math.tanh %61 : vector<2x32xf32>
    %63 = arith.subf %33, %62 : vector<2x32xf32>
    %64 = arith.mulf %57, %63 : vector<2x32xf32>
    %65 = arith.addf %62, %64 : vector<2x32xf32>
    %c0_37 = arith.constant 0 : index
    %c1_38 = arith.constant 1 : index
    %c0_39 = arith.constant 0 : index
    %66 = vector.load %arg7[%c0_37, %c1_38, %c0_39] : memref<2x8x32xf32, #tpu.memory_space<vmem>>, vector<2x1x32xf32>
    %67 = vector.shape_cast %66 : vector<2x1x32xf32> to vector<2x32xf32>
    %68 = vector.shape_cast %65 : vector<2x32xf32> to vector<2x1x32xf32>
    tpu.vector_store %arg7[%c0_37, %c1_38, %c0_39], %68 {strides = array<i32>} : memref<2x8x32xf32, #tpu.memory_space<vmem>>, vector<2x1x32xf32>,
    %cst_40 = arith.constant dense<0.000000e+00> : vector<2x32xf32>
    %69 = tpu.matmul %65, %0, %cst_40 {dimension_numbers = #tpu.dot_dimension_numbers<[1], [0], [0], [1], [0, 0, 1, 1], [], []>} : vector<2x32xf32>, vector<32x32xf32>, vector<2x32xf32> -> vector<2x32xf32>
    %cst_41 = arith.constant dense<0.000000e+00> : vector<2x32xf32>
    %70 = tpu.matmul %65, %1, %cst_41 {dimension_numbers = #tpu.dot_dimension_numbers<[1], [0], [0], [1], [0, 0, 1, 1], [], []>} : vector<2x32xf32>, vector<32x32xf32>, vector<2x32xf32> -> vector<2x32xf32>
    %cst_42 = arith.constant dense<0.000000e+00> : vector<2x32xf32>
    %71 = tpu.matmul %65, %2, %cst_42 {dimension_numbers = #tpu.dot_dimension_numbers<[1], [0], [0], [1], [0, 0, 1, 1], [], []>} : vector<2x32xf32>, vector<32x32xf32>, vector<2x32xf32> -> vector<2x32xf32>
    %72 = vector.broadcast %3 : vector<1x32xf32> to vector<2x32xf32>
    %73 = arith.addf %71, %72 : vector<2x32xf32>
    %c2 = arith.constant 2 : index
    %c0_43 = arith.constant 0 : index
    %c0_44 = arith.constant 0 : index
    %74 = vector.load %arg0[%c2, %c0_43, %c0_44] : memref<8x2x32xf32, #tpu.memory_space<vmem>>, vector<1x2x32xf32>
    %75 = vector.shape_cast %74 : vector<1x2x32xf32> to vector<2x32xf32>
    %76 = arith.addf %75, %69 : vector<2x32xf32>
    %77 = arith.negf %76 : vector<2x32xf32>
    %78 = math.exp %77 : vector<2x32xf32>
    %cst_45 = arith.constant 1.000000e+00 : f32
    %79 = vector.broadcast %cst_45 : f32 to vector<2x32xf32>
    %80 = arith.addf %79, %78 : vector<2x32xf32>
    %81 = arith.divf %79, %80 : vector<2x32xf32>
    %c2_46 = arith.constant 2 : index
    %c0_47 = arith.constant 0 : index
    %c0_48 = arith.constant 0 : index
    %82 = vector.load %arg1[%c2_46, %c0_47, %c0_48] : memref<8x2x32xf32, #tpu.memory_space<vmem>>, vector<1x2x32xf32>
    %83 = vector.shape_cast %82 : vector<1x2x32xf32> to vector<2x32xf32>
    %84 = arith.addf %83, %70 : vector<2x32xf32>
    %85 = arith.negf %84 : vector<2x32xf32>
    %86 = math.exp %85 : vector<2x32xf32>
    %cst_49 = arith.constant 1.000000e+00 : f32
    %87 = vector.broadcast %cst_49 : f32 to vector<2x32xf32>
    %88 = arith.addf %87, %86 : vector<2x32xf32>
    %89 = arith.divf %87, %88 : vector<2x32xf32>
    %c2_50 = arith.constant 2 : index
    %c0_51 = arith.constant 0 : index
    %c0_52 = arith.constant 0 : index
    %90 = vector.load %arg2[%c2_50, %c0_51, %c0_52] : memref<8x2x32xf32, #tpu.memory_space<vmem>>, vector<1x2x32xf32>
    %91 = vector.shape_cast %90 : vector<1x2x32xf32> to vector<2x32xf32>
    %92 = arith.mulf %81, %73 : vector<2x32xf32>
    %93 = arith.addf %91, %92 : vector<2x32xf32>
    %94 = math.tanh %93 : vector<2x32xf32>
    %95 = arith.subf %65, %94 : vector<2x32xf32>
    %96 = arith.mulf %89, %95 : vector<2x32xf32>
    %97 = arith.addf %94, %96 : vector<2x32xf32>
    %c0_53 = arith.constant 0 : index
    %c2_54 = arith.constant 2 : index
    %c0_55 = arith.constant 0 : index
    %98 = vector.load %arg7[%c0_53, %c2_54, %c0_55] : memref<2x8x32xf32, #tpu.memory_space<vmem>>, vector<2x1x32xf32>
    %99 = vector.shape_cast %98 : vector<2x1x32xf32> to vector<2x32xf32>
    %100 = vector.shape_cast %97 : vector<2x32xf32> to vector<2x1x32xf32>
    tpu.vector_store %arg7[%c0_53, %c2_54, %c0_55], %100 {strides = array<i32>} : memref<2x8x32xf32, #tpu.memory_space<vmem>>, vector<2x1x32xf32>,
    %cst_56 = arith.constant dense<0.000000e+00> : vector<2x32xf32>
    %101 = tpu.matmul %97, %0, %cst_56 {dimension_numbers = #tpu.dot_dimension_numbers<[1], [0], [0], [1], [0, 0, 1, 1], [], []>} : vector<2x32xf32>, vector<32x32xf32>, vector<2x32xf32> -> vector<2x32xf32>
    %cst_57 = arith.constant dense<0.000000e+00> : vector<2x32xf32>
    %102 = tpu.matmul %97, %1, %cst_57 {dimension_numbers = #tpu.dot_dimension_numbers<[1], [0], [0], [1], [0, 0, 1, 1], [], []>} : vector<2x32xf32>, vector<32x32xf32>, vector<2x32xf32> -> vector<2x32xf32>
    %cst_58 = arith.constant dense<0.000000e+00> : vector<2x32xf32>
    %103 = tpu.matmul %97, %2, %cst_58 {dimension_numbers = #tpu.dot_dimension_numbers<[1], [0], [0], [1], [0, 0, 1, 1], [], []>} : vector<2x32xf32>, vector<32x32xf32>, vector<2x32xf32> -> vector<2x32xf32>
    %104 = vector.broadcast %3 : vector<1x32xf32> to vector<2x32xf32>
    %105 = arith.addf %103, %104 : vector<2x32xf32>
    %c3 = arith.constant 3 : index
    %c0_59 = arith.constant 0 : index
    %c0_60 = arith.constant 0 : index
    %106 = vector.load %arg0[%c3, %c0_59, %c0_60] : memref<8x2x32xf32, #tpu.memory_space<vmem>>, vector<1x2x32xf32>
    %107 = vector.shape_cast %106 : vector<1x2x32xf32> to vector<2x32xf32>
    %108 = arith.addf %107, %101 : vector<2x32xf32>
    %109 = arith.negf %108 : vector<2x32xf32>
    %110 = math.exp %109 : vector<2x32xf32>
    %cst_61 = arith.constant 1.000000e+00 : f32
    %111 = vector.broadcast %cst_61 : f32 to vector<2x32xf32>
    %112 = arith.addf %111, %110 : vector<2x32xf32>
    %113 = arith.divf %111, %112 : vector<2x32xf32>
    %c3_62 = arith.constant 3 : index
    %c0_63 = arith.constant 0 : index
    %c0_64 = arith.constant 0 : index
    %114 = vector.load %arg1[%c3_62, %c0_63, %c0_64] : memref<8x2x32xf32, #tpu.memory_space<vmem>>, vector<1x2x32xf32>
    %115 = vector.shape_cast %114 : vector<1x2x32xf32> to vector<2x32xf32>
    %116 = arith.addf %115, %102 : vector<2x32xf32>
    %117 = arith.negf %116 : vector<2x32xf32>
    %118 = math.exp %117 : vector<2x32xf32>
    %cst_65 = arith.constant 1.000000e+00 : f32
    %119 = vector.broadcast %cst_65 : f32 to vector<2x32xf32>
    %120 = arith.addf %119, %118 : vector<2x32xf32>
    %121 = arith.divf %119, %120 : vector<2x32xf32>
    %c3_66 = arith.constant 3 : index
    %c0_67 = arith.constant 0 : index
    %c0_68 = arith.constant 0 : index
    %122 = vector.load %arg2[%c3_66, %c0_67, %c0_68] : memref<8x2x32xf32, #tpu.memory_space<vmem>>, vector<1x2x32xf32>
    %123 = vector.shape_cast %122 : vector<1x2x32xf32> to vector<2x32xf32>
    %124 = arith.mulf %113, %105 : vector<2x32xf32>
    %125 = arith.addf %123, %124 : vector<2x32xf32>
    %126 = math.tanh %125 : vector<2x32xf32>
    %127 = arith.subf %97, %126 : vector<2x32xf32>
    %128 = arith.mulf %121, %127 : vector<2x32xf32>
    %129 = arith.addf %126, %128 : vector<2x32xf32>
    %c0_69 = arith.constant 0 : index
    %c3_70 = arith.constant 3 : index
    %c0_71 = arith.constant 0 : index
    %130 = vector.load %arg7[%c0_69, %c3_70, %c0_71] : memref<2x8x32xf32, #tpu.memory_space<vmem>>, vector<2x1x32xf32>
    %131 = vector.shape_cast %130 : vector<2x1x32xf32> to vector<2x32xf32>
    %132 = vector.shape_cast %129 : vector<2x32xf32> to vector<2x1x32xf32>
    tpu.vector_store %arg7[%c0_69, %c3_70, %c0_71], %132 {strides = array<i32>} : memref<2x8x32xf32, #tpu.memory_space<vmem>>, vector<2x1x32xf32>,
    %cst_72 = arith.constant dense<0.000000e+00> : vector<2x32xf32>
    %133 = tpu.matmul %129, %0, %cst_72 {dimension_numbers = #tpu.dot_dimension_numbers<[1], [0], [0], [1], [0, 0, 1, 1], [], []>} : vector<2x32xf32>, vector<32x32xf32>, vector<2x32xf32> -> vector<2x32xf32>
    %cst_73 = arith.constant dense<0.000000e+00> : vector<2x32xf32>
    %134 = tpu.matmul %129, %1, %cst_73 {dimension_numbers = #tpu.dot_dimension_numbers<[1], [0], [0], [1], [0, 0, 1, 1], [], []>} : vector<2x32xf32>, vector<32x32xf32>, vector<2x32xf32> -> vector<2x32xf32>
    %cst_74 = arith.constant dense<0.000000e+00> : vector<2x32xf32>
    %135 = tpu.matmul %129, %2, %cst_74 {dimension_numbers = #tpu.dot_dimension_numbers<[1], [0], [0], [1], [0, 0, 1, 1], [], []>} : vector<2x32xf32>, vector<32x32xf32>, vector<2x32xf32> -> vector<2x32xf32>
    %136 = vector.broadcast %3 : vector<1x32xf32> to vector<2x32xf32>
    %137 = arith.addf %135, %136 : vector<2x32xf32>
    %c4 = arith.constant 4 : index
    %c0_75 = arith.constant 0 : index
    %c0_76 = arith.constant 0 : index
    %138 = vector.load %arg0[%c4, %c0_75, %c0_76] : memref<8x2x32xf32, #tpu.memory_space<vmem>>, vector<1x2x32xf32>
    %139 = vector.shape_cast %138 : vector<1x2x32xf32> to vector<2x32xf32>
    %140 = arith.addf %139, %133 : vector<2x32xf32>
    %141 = arith.negf %140 : vector<2x32xf32>
    %142 = math.exp %141 : vector<2x32xf32>
    %cst_77 = arith.constant 1.000000e+00 : f32
    %143 = vector.broadcast %cst_77 : f32 to vector<2x32xf32>
    %144 = arith.addf %143, %142 : vector<2x32xf32>
    %145 = arith.divf %143, %144 : vector<2x32xf32>
    %c4_78 = arith.constant 4 : index
    %c0_79 = arith.constant 0 : index
    %c0_80 = arith.constant 0 : index
    %146 = vector.load %arg1[%c4_78, %c0_79, %c0_80] : memref<8x2x32xf32, #tpu.memory_space<vmem>>, vector<1x2x32xf32>
    %147 = vector.shape_cast %146 : vector<1x2x32xf32> to vector<2x32xf32>
    %148 = arith.addf %147, %134 : vector<2x32xf32>
    %149 = arith.negf %148 : vector<2x32xf32>
    %150 = math.exp %149 : vector<2x32xf32>
    %cst_81 = arith.constant 1.000000e+00 : f32
    %151 = vector.broadcast %cst_81 : f32 to vector<2x32xf32>
    %152 = arith.addf %151, %150 : vector<2x32xf32>
    %153 = arith.divf %151, %152 : vector<2x32xf32>
    %c4_82 = arith.constant 4 : index
    %c0_83 = arith.constant 0 : index
    %c0_84 = arith.constant 0 : index
    %154 = vector.load %arg2[%c4_82, %c0_83, %c0_84] : memref<8x2x32xf32, #tpu.memory_space<vmem>>, vector<1x2x32xf32>
    %155 = vector.shape_cast %154 : vector<1x2x32xf32> to vector<2x32xf32>
    %156 = arith.mulf %145, %137 : vector<2x32xf32>
    %157 = arith.addf %155, %156 : vector<2x32xf32>
    %158 = math.tanh %157 : vector<2x32xf32>
    %159 = arith.subf %129, %158 : vector<2x32xf32>
    %160 = arith.mulf %153, %159 : vector<2x32xf32>
    %161 = arith.addf %158, %160 : vector<2x32xf32>
    %c0_85 = arith.constant 0 : index
    %c4_86 = arith.constant 4 : index
    %c0_87 = arith.constant 0 : index
    %162 = vector.load %arg7[%c0_85, %c4_86, %c0_87] : memref<2x8x32xf32, #tpu.memory_space<vmem>>, vector<2x1x32xf32>
    %163 = vector.shape_cast %162 : vector<2x1x32xf32> to vector<2x32xf32>
    %164 = vector.shape_cast %161 : vector<2x32xf32> to vector<2x1x32xf32>
    tpu.vector_store %arg7[%c0_85, %c4_86, %c0_87], %164 {strides = array<i32>} : memref<2x8x32xf32, #tpu.memory_space<vmem>>, vector<2x1x32xf32>,
    %cst_88 = arith.constant dense<0.000000e+00> : vector<2x32xf32>
    %165 = tpu.matmul %161, %0, %cst_88 {dimension_numbers = #tpu.dot_dimension_numbers<[1], [0], [0], [1], [0, 0, 1, 1], [], []>} : vector<2x32xf32>, vector<32x32xf32>, vector<2x32xf32> -> vector<2x32xf32>
    %cst_89 = arith.constant dense<0.000000e+00> : vector<2x32xf32>
    %166 = tpu.matmul %161, %1, %cst_89 {dimension_numbers = #tpu.dot_dimension_numbers<[1], [0], [0], [1], [0, 0, 1, 1], [], []>} : vector<2x32xf32>, vector<32x32xf32>, vector<2x32xf32> -> vector<2x32xf32>
    %cst_90 = arith.constant dense<0.000000e+00> : vector<2x32xf32>
    %167 = tpu.matmul %161, %2, %cst_90 {dimension_numbers = #tpu.dot_dimension_numbers<[1], [0], [0], [1], [0, 0, 1, 1], [], []>} : vector<2x32xf32>, vector<32x32xf32>, vector<2x32xf32> -> vector<2x32xf32>
    %168 = vector.broadcast %3 : vector<1x32xf32> to vector<2x32xf32>
    %169 = arith.addf %167, %168 : vector<2x32xf32>
    %c5 = arith.constant 5 : index
    %c0_91 = arith.constant 0 : index
    %c0_92 = arith.constant 0 : index
    %170 = vector.load %arg0[%c5, %c0_91, %c0_92] : memref<8x2x32xf32, #tpu.memory_space<vmem>>, vector<1x2x32xf32>
    %171 = vector.shape_cast %170 : vector<1x2x32xf32> to vector<2x32xf32>
    %172 = arith.addf %171, %165 : vector<2x32xf32>
    %173 = arith.negf %172 : vector<2x32xf32>
    %174 = math.exp %173 : vector<2x32xf32>
    %cst_93 = arith.constant 1.000000e+00 : f32
    %175 = vector.broadcast %cst_93 : f32 to vector<2x32xf32>
    %176 = arith.addf %175, %174 : vector<2x32xf32>
    %177 = arith.divf %175, %176 : vector<2x32xf32>
    %c5_94 = arith.constant 5 : index
    %c0_95 = arith.constant 0 : index
    %c0_96 = arith.constant 0 : index
    %178 = vector.load %arg1[%c5_94, %c0_95, %c0_96] : memref<8x2x32xf32, #tpu.memory_space<vmem>>, vector<1x2x32xf32>
    %179 = vector.shape_cast %178 : vector<1x2x32xf32> to vector<2x32xf32>
    %180 = arith.addf %179, %166 : vector<2x32xf32>
    %181 = arith.negf %180 : vector<2x32xf32>
    %182 = math.exp %181 : vector<2x32xf32>
    %cst_97 = arith.constant 1.000000e+00 : f32
    %183 = vector.broadcast %cst_97 : f32 to vector<2x32xf32>
    %184 = arith.addf %183, %182 : vector<2x32xf32>
    %185 = arith.divf %183, %184 : vector<2x32xf32>
    %c5_98 = arith.constant 5 : index
    %c0_99 = arith.constant 0 : index
    %c0_100 = arith.constant 0 : index
    %186 = vector.load %arg2[%c5_98, %c0_99, %c0_100] : memref<8x2x32xf32, #tpu.memory_space<vmem>>, vector<1x2x32xf32>
    %187 = vector.shape_cast %186 : vector<1x2x32xf32> to vector<2x32xf32>
    %188 = arith.mulf %177, %169 : vector<2x32xf32>
    %189 = arith.addf %187, %188 : vector<2x32xf32>
    %190 = math.tanh %189 : vector<2x32xf32>
    %191 = arith.subf %161, %190 : vector<2x32xf32>
    %192 = arith.mulf %185, %191 : vector<2x32xf32>
    %193 = arith.addf %190, %192 : vector<2x32xf32>
    %c0_101 = arith.constant 0 : index
    %c5_102 = arith.constant 5 : index
    %c0_103 = arith.constant 0 : index
    %194 = vector.load %arg7[%c0_101, %c5_102, %c0_103] : memref<2x8x32xf32, #tpu.memory_space<vmem>>, vector<2x1x32xf32>
    %195 = vector.shape_cast %194 : vector<2x1x32xf32> to vector<2x32xf32>
    %196 = vector.shape_cast %193 : vector<2x32xf32> to vector<2x1x32xf32>
    tpu.vector_store %arg7[%c0_101, %c5_102, %c0_103], %196 {strides = array<i32>} : memref<2x8x32xf32, #tpu.memory_space<vmem>>, vector<2x1x32xf32>,
    %cst_104 = arith.constant dense<0.000000e+00> : vector<2x32xf32>
    %197 = tpu.matmul %193, %0, %cst_104 {dimension_numbers = #tpu.dot_dimension_numbers<[1], [0], [0], [1], [0, 0, 1, 1], [], []>} : vector<2x32xf32>, vector<32x32xf32>, vector<2x32xf32> -> vector<2x32xf32>
    %cst_105 = arith.constant dense<0.000000e+00> : vector<2x32xf32>
    %198 = tpu.matmul %193, %1, %cst_105 {dimension_numbers = #tpu.dot_dimension_numbers<[1], [0], [0], [1], [0, 0, 1, 1], [], []>} : vector<2x32xf32>, vector<32x32xf32>, vector<2x32xf32> -> vector<2x32xf32>
    %cst_106 = arith.constant dense<0.000000e+00> : vector<2x32xf32>
    %199 = tpu.matmul %193, %2, %cst_106 {dimension_numbers = #tpu.dot_dimension_numbers<[1], [0], [0], [1], [0, 0, 1, 1], [], []>} : vector<2x32xf32>, vector<32x32xf32>, vector<2x32xf32> -> vector<2x32xf32>
    %200 = vector.broadcast %3 : vector<1x32xf32> to vector<2x32xf32>
    %201 = arith.addf %199, %200 : vector<2x32xf32>
    %c6 = arith.constant 6 : index
    %c0_107 = arith.constant 0 : index
    %c0_108 = arith.constant 0 : index
    %202 = vector.load %arg0[%c6, %c0_107, %c0_108] : memref<8x2x32xf32, #tpu.memory_space<vmem>>, vector<1x2x32xf32>
    %203 = vector.shape_cast %202 : vector<1x2x32xf32> to vector<2x32xf32>
    %204 = arith.addf %203, %197 : vector<2x32xf32>
    %205 = arith.negf %204 : vector<2x32xf32>
    %206 = math.exp %205 : vector<2x32xf32>
    %cst_109 = arith.constant 1.000000e+00 : f32
    %207 = vector.broadcast %cst_109 : f32 to vector<2x32xf32>
    %208 = arith.addf %207, %206 : vector<2x32xf32>
    %209 = arith.divf %207, %208 : vector<2x32xf32>
    %c6_110 = arith.constant 6 : index
    %c0_111 = arith.constant 0 : index
    %c0_112 = arith.constant 0 : index
    %210 = vector.load %arg1[%c6_110, %c0_111, %c0_112] : memref<8x2x32xf32, #tpu.memory_space<vmem>>, vector<1x2x32xf32>
    %211 = vector.shape_cast %210 : vector<1x2x32xf32> to vector<2x32xf32>
    %212 = arith.addf %211, %198 : vector<2x32xf32>
    %213 = arith.negf %212 : vector<2x32xf32>
    %214 = math.exp %213 : vector<2x32xf32>
    %cst_113 = arith.constant 1.000000e+00 : f32
    %215 = vector.broadcast %cst_113 : f32 to vector<2x32xf32>
    %216 = arith.addf %215, %214 : vector<2x32xf32>
    %217 = arith.divf %215, %216 : vector<2x32xf32>
    %c6_114 = arith.constant 6 : index
    %c0_115 = arith.constant 0 : index
    %c0_116 = arith.constant 0 : index
    %218 = vector.load %arg2[%c6_114, %c0_115, %c0_116] : memref<8x2x32xf32, #tpu.memory_space<vmem>>, vector<1x2x32xf32>
    %219 = vector.shape_cast %218 : vector<1x2x32xf32> to vector<2x32xf32>
    %220 = arith.mulf %209, %201 : vector<2x32xf32>
    %221 = arith.addf %219, %220 : vector<2x32xf32>
    %222 = math.tanh %221 : vector<2x32xf32>
    %223 = arith.subf %193, %222 : vector<2x32xf32>
    %224 = arith.mulf %217, %223 : vector<2x32xf32>
    %225 = arith.addf %222, %224 : vector<2x32xf32>
    %c0_117 = arith.constant 0 : index
    %c6_118 = arith.constant 6 : index
    %c0_119 = arith.constant 0 : index
    %226 = vector.load %arg7[%c0_117, %c6_118, %c0_119] : memref<2x8x32xf32, #tpu.memory_space<vmem>>, vector<2x1x32xf32>
    %227 = vector.shape_cast %226 : vector<2x1x32xf32> to vector<2x32xf32>
    %228 = vector.shape_cast %225 : vector<2x32xf32> to vector<2x1x32xf32>
    tpu.vector_store %arg7[%c0_117, %c6_118, %c0_119], %228 {strides = array<i32>} : memref<2x8x32xf32, #tpu.memory_space<vmem>>, vector<2x1x32xf32>,
    %cst_120 = arith.constant dense<0.000000e+00> : vector<2x32xf32>
    %229 = tpu.matmul %225, %0, %cst_120 {dimension_numbers = #tpu.dot_dimension_numbers<[1], [0], [0], [1], [0, 0, 1, 1], [], []>} : vector<2x32xf32>, vector<32x32xf32>, vector<2x32xf32> -> vector<2x32xf32>
    %cst_121 = arith.constant dense<0.000000e+00> : vector<2x32xf32>
    %230 = tpu.matmul %225, %1, %cst_121 {dimension_numbers = #tpu.dot_dimension_numbers<[1], [0], [0], [1], [0, 0, 1, 1], [], []>} : vector<2x32xf32>, vector<32x32xf32>, vector<2x32xf32> -> vector<2x32xf32>
    %cst_122 = arith.constant dense<0.000000e+00> : vector<2x32xf32>
    %231 = tpu.matmul %225, %2, %cst_122 {dimension_numbers = #tpu.dot_dimension_numbers<[1], [0], [0], [1], [0, 0, 1, 1], [], []>} : vector<2x32xf32>, vector<32x32xf32>, vector<2x32xf32> -> vector<2x32xf32>
    %232 = vector.broadcast %3 : vector<1x32xf32> to vector<2x32xf32>
    %233 = arith.addf %231, %232 : vector<2x32xf32>
    %c7 = arith.constant 7 : index
    %c0_123 = arith.constant 0 : index
    %c0_124 = arith.constant 0 : index
    %234 = vector.load %arg0[%c7, %c0_123, %c0_124] : memref<8x2x32xf32, #tpu.memory_space<vmem>>, vector<1x2x32xf32>
    %235 = vector.shape_cast %234 : vector<1x2x32xf32> to vector<2x32xf32>
    %236 = arith.addf %235, %229 : vector<2x32xf32>
    %237 = arith.negf %236 : vector<2x32xf32>
    %238 = math.exp %237 : vector<2x32xf32>
    %cst_125 = arith.constant 1.000000e+00 : f32
    %239 = vector.broadcast %cst_125 : f32 to vector<2x32xf32>
    %240 = arith.addf %239, %238 : vector<2x32xf32>
    %241 = arith.divf %239, %240 : vector<2x32xf32>
    %c7_126 = arith.constant 7 : index
    %c0_127 = arith.constant 0 : index
    %c0_128 = arith.constant 0 : index
    %242 = vector.load %arg1[%c7_126, %c0_127, %c0_128] : memref<8x2x32xf32, #tpu.memory_space<vmem>>, vector<1x2x32xf32>
    %243 = vector.shape_cast %242 : vector<1x2x32xf32> to vector<2x32xf32>
    %244 = arith.addf %243, %230 : vector<2x32xf32>
    %245 = arith.negf %244 : vector<2x32xf32>
    %246 = math.exp %245 : vector<2x32xf32>
    %cst_129 = arith.constant 1.000000e+00 : f32
    %247 = vector.broadcast %cst_129 : f32 to vector<2x32xf32>
    %248 = arith.addf %247, %246 : vector<2x32xf32>
    %249 = arith.divf %247, %248 : vector<2x32xf32>
    %c7_130 = arith.constant 7 : index
    %c0_131 = arith.constant 0 : index
    %c0_132 = arith.constant 0 : index
    %250 = vector.load %arg2[%c7_130, %c0_131, %c0_132] : memref<8x2x32xf32, #tpu.memory_space<vmem>>, vector<1x2x32xf32>
    %251 = vector.shape_cast %250 : vector<1x2x32xf32> to vector<2x32xf32>
    %252 = arith.mulf %241, %233 : vector<2x32xf32>
    %253 = arith.addf %251, %252 : vector<2x32xf32>
    %254 = math.tanh %253 : vector<2x32xf32>
    %255 = arith.subf %225, %254 : vector<2x32xf32>
    %256 = arith.mulf %249, %255 : vector<2x32xf32>
    %257 = arith.addf %254, %256 : vector<2x32xf32>
    %c0_133 = arith.constant 0 : index
    %c7_134 = arith.constant 7 : index
    %c0_135 = arith.constant 0 : index
    %258 = vector.load %arg7[%c0_133, %c7_134, %c0_135] : memref<2x8x32xf32, #tpu.memory_space<vmem>>, vector<2x1x32xf32>
    %259 = vector.shape_cast %258 : vector<2x1x32xf32> to vector<2x32xf32>
    %260 = vector.shape_cast %257 : vector<2x32xf32> to vector<2x1x32xf32>
    tpu.vector_store %arg7[%c0_133, %c7_134, %c0_135], %260 {strides = array<i32>} : memref<2x8x32xf32, #tpu.memory_space<vmem>>, vector<2x1x32xf32>,
    return
  }
}

</mosaic_0001>

<bundles_post_ra>
// kernel: gru_forward.1
= control target key start
LH: loop header
LB: loop body
LE: loop exit
PB: predicated region body
PF: predicated region fallthrough
CT: control target
= control target key end

     0   :  { %v2733_v1 = vmov 0.0   ;;  %vm2734_vm0 = vmmov 0   ;;  %s3275_s0 = inlined_call_operand.vmem [shape: f32[8,2,32], index: 0, kind: input, shape index: {}]   ;;  %s3276_s1 = inlined_call_operand.vmem [shape: f32[8,2,32], index: 1, kind: input, shape index: {}]   ;;  %s3277_s2 = inlined_call_operand.vmem [shape: f32[8,2,32], index: 2, kind: input, shape index: {}]   ;;  %s3278_s3 = inlined_call_operand.vmem [shape: f32[32,32], index: 3, kind: input, shape index: {}]   ;;  %s3279_s4 = inlined_call_operand.vmem [shape: f32[32,32], index: 4, kind: input, shape index: {}]   ;;  %s3280_s5 = inlined_call_operand.vmem [shape: f32[32,32], index: 5, kind: input, shape index: {}]   ;;  %s3281_s6 = inlined_call_operand.vmem [shape: f32[1,32], index: 6, kind: input, shape index: {}]   ;;  %s3282_s7 = inlined_call_operand.hbm [shape: f32[2,8,32], index: 7, kind: output, shape index: {}]  }
   0x1   :  { %v2782_v0 = vld [vmem:[%s3278_s3 + $0x18] sm:$0xff]  ;;  %2361 = vmatprep.subr.mxu0 %v2733_v1  ;;  %v2788_v2 = vld [vmem:[%s3278_s3 + $0x10] sm:$0xff]  ;;  %2369 = vmatprep.mubr.msk.f32.mxu0 %vm2734_vm0, %v2733_v1  ;;  %v2808_v5 = vld [vmem:[%s3278_s3 + $0x8] sm:$0xff] }
   0x2   :  { %v2795_v3 = vld [vmem:[%s3279_s4 + $0x18] sm:$0xff]  ;;  %2362 = vmatpush3.msra.mxu0 %v2782_v0  ;;  %2372 = vmatprep.subr.mxu1 %v2733_v1  ;;  %v2802_v4 = vld [vmem:[%s3279_s4 + $0x10] sm:$0xff]  ;;  %v2816_v6 = vld [vmem:[%s3279_s4 + $0x8] sm:$0xff] }
   0x3   :  { %2363 = vmatprep.subr.mxu0 %v2733_v1  ;;  %2373 = vmatpush3.msra.mxu1 %v2795_v3 }
   0x4   :  { %2364 = vmatpush3.msra.mxu0 %v2788_v2  ;;  %2374 = vmatprep.subr.mxu1 %v2733_v1 }
   0x5   :  { %12 = vsyncpa [#allocation3], 0  ;;  %2365 = vmatprep.subr.mxu0 %v2733_v1  ;;  %v2822_v7 = vld [vmem:[%s3278_s3] sm:$0xff]  ;;  %2375 = vmatpush3.msra.mxu1 %v2802_v4  ;;  %v2839_v9 = vld [vmem:[%s3280_s5 + $0x18] sm:$0xff]  ;;  %v2735_v35 = vmov 1966171168   ;;  %v287_v37 = vlaneseq }
   0x6   :  { %2366 = vmatpush3.msra.mxu0 %v2808_v5  ;;  %2376 = vmatprep.subr.mxu1 %v2733_v1  ;;  %v2830_v8 = vld [vmem:[%s3279_s4] sm:$0xff]  ;;  %v2849_v10 = vld [vmem:[%s3280_s5 + $0x10] sm:$0xff]  ;;  %v2857_v11 = vld [vmem:[%s3280_s5 + $0x8] sm:$0xff]  ;;  %v285_v36 = vunpack.c.l.s4 %v2735_v35  ;;  %vm40_vm1 = vcmask 261120   ;;  %vm308_vm2 = vcmask 253952  }
   0x7   :  { %2367 = vmatprep.subr.mxu0 %v2733_v1  ;;  %2377 = vmatpush3.msra.mxu1 %v2816_v6  ;;  %v2867_v12 = vld [vmem:[%s3280_s5] sm:$0xff]  ;;  %v288_v40 = vshrl.u32 %v287_v37, 7 }
   0x8   :  { %2368 = vmatpush3.msra.mxu0 %v2822_v7  ;;  %2378 = vmatprep.subr.mxu1 %v2733_v1  ;;  %v260_v13 = vld [vmem:[%s3275_s0] sm:$0x3]  ;;  %v286_v39 = vunpack.c.0.s8 %v285_v36  ;;  %v2188_v50 = vld [vmem:[%s3275_s0 + $0x2] sm:$0x3] }
   0x9   :  { %2370 = vmatmul.mubr.f32.vlgmr.msra.gmra.mxu0 %v2733_v1  ;;  %2379 = vmatpush3.msra.mxu1 %v2830_v8  ;;  %v268_v20 = vld [vmem:[%s3276_s1] sm:$0x3]  ;;  %v2190_v58 = vld [vmem:[%s3276_s1 + $0x2] sm:$0x3] }
   0xa   :  { %2380 = vmatprep.mubr.msk.f32.mxu1 %vm2734_vm0, %v2733_v1  ;;  %2383 = vmatprep.subr.mxu0 %v2733_v1  ;;  %v2903_v27 = vld [vmem:[%s3281_s6] ss:$0 sm:$0xff]  ;;  %v2909_v44 = vsub.s32 %v286_v39, %v288_v40 }
   0xb   :  { %2381 = vmatmul.mubr.f32.vlgmr.msra.gmra.mxu1 %v2733_v1  ;;  %2384 = vmatpush3.msra.mxu0 %v2839_v9  ;;  %v276_v32 = vld [vmem:[%s3277_s2] sm:$0x3] }
   0xc   :  { %2385 = vmatprep.subr.mxu0 %v2733_v1  ;;  %2391 = vmatprep.mubr.msk.f32.mxu0 %vm2734_vm0, %v2733_v1 }
   0xd   :  { %2386 = vmatpush3.msra.mxu0 %v2849_v10  ;;  %2394 = vmatprep.subr.mxu1 %v2733_v1 }
   0xe   :  { %2387 = vmatprep.subr.mxu0 %v2733_v1  ;;  %2395 = vmatpush3.msra.mxu1 %v2782_v0 }
   0xf   :  { %2388 = vmatpush3.msra.mxu0 %v2857_v11  ;;  %2396 = vmatprep.subr.mxu1 %v2733_v1 }
  0x10   :  { %2389 = vmatprep.subr.mxu0 %v2733_v1  ;;  %2397 = vmatpush3.msra.mxu1 %v2788_v2 }
  0x11   :  { %2390 = vmatpush3.msra.mxu0 %v2867_v12  ;;  %2398 = vmatprep.subr.mxu1 %v2733_v1 }
  0x12   :  { %2392 = vmatmul.mubr.f32.vlgmr.msra.gmra.mxu0 %v2733_v1  ;;  %2405 = vmatprep.subr.mxu0 %v2733_v1 }
  0x13   :  { %2406 = vmatpush3.msra.mxu0 %v2795_v3  ;;  %2399 = vmatpush3.msra.mxu1 %v2808_v5 }
  0x14   :  { %2407 = vmatprep.subr.mxu0 %v2733_v1  ;;  %2400 = vmatprep.subr.mxu1 %v2733_v1 }
  0x15   :  { %2408 = vmatpush3.msra.mxu0 %v2802_v4  ;;  %2401 = vmatpush3.msra.mxu1 %v2822_v7 }
  0x16   :  { %2409 = vmatprep.subr.mxu0 %v2733_v1  ;;  %2402 = vmatprep.mubr.msk.f32.mxu1 %vm2734_vm0, %v2733_v1 }
  0x17   :  { %2410 = vmatpush3.msra.mxu0 %v2816_v6  ;;  %2413 = vmatprep.mubr.msk.f32.mxu0 %vm2734_vm0, %v2733_v1 }
  0x18   :  { %2411 = vmatprep.subr.mxu0 %v2733_v1  ;;  %2416 = vmatprep.subr.mxu1 %v2733_v1 }
  0x19   :  { %2412 = vmatpush3.msra.mxu0 %v2830_v8 }
  0x1a   :  { %2427 = vmatprep.subr.mxu0 %v2733_v1 }
  0xc9   :  { %v110_v14 = vpop.f32.mrf.mxu0 }
  0xca   :  { %v261_v15 = vadd.f32 %v260_v13, %v110_v14 }
  0xcb   :  { %v2371_v16 = vpop.f32.mrf.mxu0  ;;  %v180_v17 = vpop.f32.mrf.mxu1 }
  0xcc   :  { %v2183_v18 = vmul.f32 -1.442695, %v261_v15  ;;  %v269_v22 = vadd.f32 %v268_v20, %v180_v17  ;;  %v2192_v16 = vld [vmem:[%s3277_s2 + $0x2] sm:$0x3] }
  0xcd   :  { %v2382_v19 = vpop.f32.mrf.mxu1 }
  0xce   :  { %2631 = vpow2.f32 %v2183_v18  ;;  %v2184_v24 = vmul.f32 -1.442695, %v269_v22 }
  0xd0   :  { %2633 = vpow2.f32 %v2184_v24 }
  0xd2   :  { %v256_v21 = vpop.f32.mrf.mxu0 }
  0xd3   :  { %v257_v29 = vadd.f32 %v2903_v27, %v256_v21 }
  0xd4   :  { %v2393_v23 = vpop.f32.mrf.mxu0 }
  0xdb   :  { %v2632_v25 = vpop.eup %2631 }
  0xdc   :  { %v265_v26 = vadd.f32 1.0, %v2632_v25 }
  0xdd   :  { %v2634_v28 = vpop.eup %2633 }
  0xde   :  { %2635 = vrcp.f32 %v265_v26  ;;  %v273_v31 = vadd.f32 1.0, %v2634_v28 }
  0xe0   :  { %2637 = vrcp.f32 %v273_v31 }
  0xeb   :  { %v2636_v30 = vpop.eup %2635 }
  0xec   :  { %v277_v33 = vmul.f32 %v2636_v30, %v257_v29  ;;  %v2196_v30 = vld [vmem:[%s3275_s0 + $0x4] sm:$0x3] }
  0xed   :  { %v2638_v38 = vpop.eup %2637 }
  0xee   :  { %v278_v34 = vadd.f32 %v277_v33, %v276_v32 }
  0xf0   :  { %2639 = vtanh.f32 %v278_v34 }
  0xfd   :  { %v2640_v41 = vpop.eup %2639 }
  0xfe   :  { %v280_v42 = vsub.f32 0.0, %v2640_v41 }
 0x100   :  { %v281_v43 = vmul.f32 %v2638_v38, %v280_v42  ;;  %v2198_v38 = vld [vmem:[%s3276_s1 + $0x4] sm:$0x3] }
 0x102   :  { %v2911_v45 = vadd.f32 %v2640_v41, %v281_v43 }
 0x104   :  { %v290_v46 = vrot.slane %v2911_v45, %v2909_v44  ;;  %2403 = vmatmul.mubr.msk.f32.vlgmr.msra.gmra.mxu1 %vm40_vm1, %v2911_v45  ;;  %2414 = vmatmul.mubr.msk.f32.vlgmr.msra.gmra.mxu0 %vm40_vm1, %v2911_v45 }
 0x105   :  { %2417 = vmatpush3.msra.mxu1 %v2839_v9  ;;  %2424 = vmatprep.mubr.msk.f32.mxu1 %vm2734_vm0, %v2733_v1 }
 0x106   :  { %v291_v47 = vcombine.high %v290_v46, %v290_v46  ;;  %v298_v48 = vrot.slane %v290_v46, %v2909_v44  ;;  %2418 = vmatprep.subr.mxu1 %v2733_v1  ;;  %2428 = vmatpush3.msra.mxu0 %v2782_v0 }
 0x107   :  { %2419 = vmatpush3.msra.mxu1 %v2849_v10  ;;  %2429 = vmatprep.subr.mxu0 %v2733_v1 }
 0x108   :  { %v305_v49 = vrot.slane %v291_v47, %v2909_v44  ;;  %309 = vst.msk [vmem:[#allocation2] sm:$0x1] %vm308_vm2, %v298_v48  ;;  %2420 = vmatprep.subr.mxu1 %v2733_v1  ;;  %2430 = vmatpush3.msra.mxu0 %v2788_v2  ;;  %v2200_v48 = vld [vmem:[%s3277_s2 + $0x4] sm:$0x3] }
 0x109   :  { %2421 = vmatpush3.msra.mxu1 %v2857_v11  ;;  %2431 = vmatprep.subr.mxu0 %v2733_v1 }
 0x10a   :  { %310 = vst.msk [vmem:[#allocation2 + $0x8] sm:$0x1] %vm308_vm2, %v305_v49  ;;  %2422 = vmatprep.subr.mxu1 %v2733_v1  ;;  %2432 = vmatpush3.msra.mxu0 %v2808_v5 }
 0x10b   :  { %2423 = vmatpush3.msra.mxu1 %v2867_v12  ;;  %2433 = vmatprep.subr.mxu0 %v2733_v1 }
 0x10c   :  { %2425 = vmatmul.mubr.msk.f32.vlgmr.msra.gmra.mxu1 %vm40_vm1, %v2911_v45  ;;  %2438 = vmatprep.subr.mxu1 %v2733_v1 }
 0x10d   :  { %2439 = vmatpush3.msra.mxu1 %v2795_v3  ;;  %2434 = vmatpush3.msra.mxu0 %v2822_v7 }
 0x10e   :  { %2440 = vmatprep.subr.mxu1 %v2733_v1  ;;  %2435 = vmatprep.mubr.msk.f32.mxu0 %vm2734_vm0, %v2733_v1 }
 0x10f   :  { %2441 = vmatpush3.msra.mxu1 %v2802_v4  ;;  %2446 = vmatprep.mubr.msk.f32.mxu1 %vm2734_vm0, %v2733_v1 }
 0x110   :  { %2442 = vmatprep.subr.mxu1 %v2733_v1  ;;  %2449 = vmatprep.subr.mxu0 %v2733_v1 }
 0x111   :  { %2443 = vmatpush3.msra.mxu1 %v2816_v6 }
 0x112   :  { %2444 = vmatprep.subr.mxu1 %v2733_v1 }
 0x113   :  { %2445 = vmatpush3.msra.mxu1 %v2830_v8 }
 0x114   :  { %2460 = vmatprep.subr.mxu1 %v2733_v1 }
 0x1c4   :  { %v379_v51 = vpop.f32.mrf.mxu1  ;;  %v449_v52 = vpop.f32.mrf.mxu0 }
 0x1c5   :  { %v525_v53 = vadd.f32 %v2188_v50, %v379_v51  ;;  %v534_v60 = vadd.f32 %v2190_v58, %v449_v52 }
 0x1c6   :  { %v2404_v54 = vpop.f32.mrf.mxu1  ;;  %v2415_v55 = vpop.f32.mrf.mxu0 }
 0x1c7   :  { %v2189_v56 = vmul.f32 -1.442695, %v525_v53  ;;  %v2191_v61 = vmul.f32 -1.442695, %v534_v60 }
 0x1c9   :  { %2641 = vpow2.f32 %v2189_v56 }
 0x1ca   :  { %2643 = vpow2.f32 %v2191_v61  ;;  %v2204_v61 = vld [vmem:[%s3275_s0 + $0x6] sm:$0x3] }
 0x1cc   :  { %v519_v57 = vpop.f32.mrf.mxu1 }
 0x1cd   :  { %v520_v14 = vadd.f32 %v2903_v27, %v519_v57 }
 0x1ce   :  { %v2426_v59 = vpop.f32.mrf.mxu1 }
 0x1d6   :  { %v2642_v62 = vpop.eup %2641 }
 0x1d7   :  { %v529_v63 = vadd.f32 1.0, %v2642_v62  ;;  %v2644_v13 = vpop.eup %2643 }
 0x1d8   :  { %v538_v18 = vadd.f32 1.0, %v2644_v13 }
 0x1d9   :  { %2645 = vrcp.f32 %v529_v63 }
 0x1e6   :  { %v2646_v15 = vpop.eup %2645 }
 0x1e7   :  { %v543_v17 = vmul.f32 %v2646_v15, %v520_v14 }
 0x1e9   :  { %v544_v19 = vadd.f32 %v2192_v16, %v543_v17 }
 0x1eb   :  { %2647 = vtanh.f32 %v544_v19 }
 0x1ec   :  { %2649 = vrcp.f32 %v538_v18  ;;  %v2206_v18 = vld [vmem:[%s3276_s1 + $0x6] sm:$0x3] }
 0x1f8   :  { %v2648_v20 = vpop.eup %2647 }
 0x1f9   :  { %v546_v21 = vsub.f32 %v2911_v45, %v2648_v20  ;;  %v2650_v22 = vpop.eup %2649 }
 0x1fb   :  { %v547_v23 = vmul.f32 %v2650_v22, %v546_v21 }
 0x1fd   :  { %v2966_v24 = vadd.f32 %v2648_v20, %v547_v23 }
 0x1ff   :  { %v556_v25 = vrot.slane %v2966_v24, %v2909_v44  ;;  %2436 = vmatmul.mubr.msk.f32.vlgmr.msra.gmra.mxu0 %vm40_vm1, %v2966_v24  ;;  %2447 = vmatmul.mubr.msk.f32.vlgmr.msra.gmra.mxu1 %vm40_vm1, %v2966_v24 }
 0x200   :  { %2450 = vmatpush3.msra.mxu0 %v2839_v9  ;;  %2457 = vmatprep.mubr.msk.f32.mxu0 %vm2734_vm0, %v2733_v1 }
 0x201   :  { %v557_v26 = vcombine.high %v556_v25, %v556_v25  ;;  %v564_v28 = vrot.slane %v556_v25, %v2909_v44  ;;  %2451 = vmatprep.subr.mxu0 %v2733_v1  ;;  %2461 = vmatpush3.msra.mxu1 %v2782_v0 }
 0x202   :  { %2452 = vmatpush3.msra.mxu0 %v2849_v10  ;;  %2462 = vmatprep.subr.mxu1 %v2733_v1 }
 0x203   :  { %v571_v29 = vrot.slane %v557_v26, %v2909_v44  ;;  %574 = vst.msk [vmem:[#allocation2 + $0x1] sm:$0x1] %vm308_vm2, %v564_v28  ;;  %2453 = vmatprep.subr.mxu0 %v2733_v1  ;;  %2463 = vmatpush3.msra.mxu1 %v2788_v2  ;;  %v2208_v28 = vld [vmem:[%s3277_s2 + $0x6] sm:$0x3] }
 0x204   :  { %2454 = vmatpush3.msra.mxu0 %v2857_v11  ;;  %2464 = vmatprep.subr.mxu1 %v2733_v1 }
 0x205   :  { %575 = vst.msk [vmem:[#allocation2 + $0x9] sm:$0x1] %vm308_vm2, %v571_v29  ;;  %2455 = vmatprep.subr.mxu0 %v2733_v1  ;;  %2465 = vmatpush3.msra.mxu1 %v2808_v5 }
 0x206   :  { %2456 = vmatpush3.msra.mxu0 %v2867_v12  ;;  %2466 = vmatprep.subr.mxu1 %v2733_v1 }
 0x207   :  { %2458 = vmatmul.mubr.msk.f32.vlgmr.msra.gmra.mxu0 %vm40_vm1, %v2966_v24  ;;  %2471 = vmatprep.subr.mxu0 %v2733_v1 }
 0x208   :  { %2472 = vmatpush3.msra.mxu0 %v2795_v3  ;;  %2467 = vmatpush3.msra.mxu1 %v2822_v7 }
 0x209   :  { %2473 = vmatprep.subr.mxu0 %v2733_v1  ;;  %2468 = vmatprep.mubr.msk.f32.mxu1 %vm2734_vm0, %v2733_v1 }
 0x20a   :  { %2474 = vmatpush3.msra.mxu0 %v2802_v4  ;;  %2479 = vmatprep.mubr.msk.f32.mxu0 %vm2734_vm0, %v2733_v1 }
 0x20b   :  { %2475 = vmatprep.subr.mxu0 %v2733_v1  ;;  %2482 = vmatprep.subr.mxu1 %v2733_v1 }
 0x20c   :  { %2476 = vmatpush3.msra.mxu0 %v2816_v6 }
 0x20d   :  { %2477 = vmatprep.subr.mxu0 %v2733_v1 }
 0x20e   :  { %2478 = vmatpush3.msra.mxu0 %v2830_v8 }
 0x20f   :  { %2493 = vmatprep.subr.mxu0 %v2733_v1 }
 0x2bf   :  { %v644_v31 = vpop.f32.mrf.mxu0  ;;  %v714_v32 = vpop.f32.mrf.mxu1 }
 0x2c0   :  { %v790_v33 = vadd.f32 %v2196_v30, %v644_v31  ;;  %v799_v40 = vadd.f32 %v2198_v38, %v714_v32 }
 0x2c1   :  { %v2437_v34 = vpop.f32.mrf.mxu0  ;;  %v2448_v35 = vpop.f32.mrf.mxu1 }
 0x2c2   :  { %v2197_v36 = vmul.f32 -1.442695, %v790_v33  ;;  %v2199_v41 = vmul.f32 -1.442695, %v799_v40 }
 0x2c4   :  { %2651 = vpow2.f32 %v2197_v36 }
 0x2c5   :  { %2653 = vpow2.f32 %v2199_v41  ;;  %v2212_v41 = vld [vmem:[%s3275_s0 + $0x8] sm:$0x3] }
 0x2c7   :  { %v784_v37 = vpop.f32.mrf.mxu0 }
 0x2c8   :  { %v785_v46 = vadd.f32 %v2903_v27, %v784_v37 }
 0x2c9   :  { %v2459_v39 = vpop.f32.mrf.mxu0 }
 0x2d1   :  { %v2652_v42 = vpop.eup %2651 }
 0x2d2   :  { %v794_v43 = vadd.f32 1.0, %v2652_v42  ;;  %v2654_v45 = vpop.eup %2653 }
 0x2d3   :  { %v803_v50 = vadd.f32 1.0, %v2654_v45 }
 0x2d4   :  { %2655 = vrcp.f32 %v794_v43 }
 0x2e1   :  { %v2656_v47 = vpop.eup %2655 }
 0x2e2   :  { %v808_v49 = vmul.f32 %v2656_v47, %v785_v46 }
 0x2e4   :  { %v809_v51 = vadd.f32 %v2200_v48, %v808_v49 }
 0x2e6   :  { %2657 = vtanh.f32 %v809_v51 }
 0x2e7   :  { %2659 = vrcp.f32 %v803_v50  ;;  %v2214_v50 = vld [vmem:[%s3276_s1 + $0x8] sm:$0x3] }
 0x2f3   :  { %v2658_v52 = vpop.eup %2657 }
 0x2f4   :  { %v811_v53 = vsub.f32 %v2966_v24, %v2658_v52  ;;  %v2660_v54 = vpop.eup %2659 }
 0x2f6   :  { %v812_v55 = vmul.f32 %v2660_v54, %v811_v53 }
 0x2f8   :  { %v3021_v56 = vadd.f32 %v2658_v52, %v812_v55 }
 0x2fa   :  { %v821_v57 = vrot.slane %v3021_v56, %v2909_v44  ;;  %2469 = vmatmul.mubr.msk.f32.vlgmr.msra.gmra.mxu1 %vm40_vm1, %v3021_v56  ;;  %2480 = vmatmul.mubr.msk.f32.vlgmr.msra.gmra.mxu0 %vm40_vm1, %v3021_v56 }
 0x2fb   :  { %2483 = vmatpush3.msra.mxu1 %v2839_v9  ;;  %2490 = vmatprep.mubr.msk.f32.mxu1 %vm2734_vm0, %v2733_v1 }
 0x2fc   :  { %v822_v58 = vcombine.high %v821_v57, %v821_v57  ;;  %v829_v59 = vrot.slane %v821_v57, %v2909_v44  ;;  %2484 = vmatprep.subr.mxu1 %v2733_v1  ;;  %2494 = vmatpush3.msra.mxu0 %v2782_v0 }
 0x2fd   :  { %2485 = vmatpush3.msra.mxu1 %v2849_v10  ;;  %2495 = vmatprep.subr.mxu0 %v2733_v1 }
 0x2fe   :  { %v836_v60 = vrot.slane %v822_v58, %v2909_v44  ;;  %839 = vst.msk [vmem:[#allocation2 + $0x2] sm:$0x1] %vm308_vm2, %v829_v59  ;;  %2486 = vmatprep.subr.mxu1 %v2733_v1  ;;  %2496 = vmatpush3.msra.mxu0 %v2788_v2  ;;  %v2216_v59 = vld [vmem:[%s3277_s2 + $0x8] sm:$0x3] }
 0x2ff   :  { %2487 = vmatpush3.msra.mxu1 %v2857_v11  ;;  %2497 = vmatprep.subr.mxu0 %v2733_v1 }
 0x300   :  { %840 = vst.msk [vmem:[#allocation2 + $0xa] sm:$0x1] %vm308_vm2, %v836_v60  ;;  %2488 = vmatprep.subr.mxu1 %v2733_v1  ;;  %2498 = vmatpush3.msra.mxu0 %v2808_v5 }
 0x301   :  { %2489 = vmatpush3.msra.mxu1 %v2867_v12  ;;  %2499 = vmatprep.subr.mxu0 %v2733_v1 }
 0x302   :  { %2491 = vmatmul.mubr.msk.f32.vlgmr.msra.gmra.mxu1 %vm40_vm1, %v3021_v56  ;;  %2504 = vmatprep.subr.mxu1 %v2733_v1 }
 0x303   :  { %2505 = vmatpush3.msra.mxu1 %v2795_v3  ;;  %2500 = vmatpush3.msra.mxu0 %v2822_v7 }
 0x304   :  { %2506 = vmatprep.subr.mxu1 %v2733_v1  ;;  %2501 = vmatprep.mubr.msk.f32.mxu0 %vm2734_vm0, %v2733_v1 }
 0x305   :  { %2507 = vmatpush3.msra.mxu1 %v2802_v4  ;;  %2512 = vmatprep.mubr.msk.f32.mxu1 %vm2734_vm0, %v2733_v1 }
 0x306   :  { %2508 = vmatprep.subr.mxu1 %v2733_v1  ;;  %2515 = vmatprep.subr.mxu0 %v2733_v1 }
 0x307   :  { %2509 = vmatpush3.msra.mxu1 %v2816_v6 }
 0x308   :  { %2510 = vmatprep.subr.mxu1 %v2733_v1 }
 0x309   :  { %2511 = vmatpush3.msra.mxu1 %v2830_v8 }
 0x30a   :  { %2526 = vmatprep.subr.mxu1 %v2733_v1 }
 0x3ba   :  { %v909_v62 = vpop.f32.mrf.mxu1  ;;  %v979_v63 = vpop.f32.mrf.mxu0 }
 0x3bb   :  { %v1055_v13 = vadd.f32 %v2204_v61, %v909_v62  ;;  %v1064_v20 = vadd.f32 %v2206_v18, %v979_v63 }
 0x3bc   :  { %v2470_v14 = vpop.f32.mrf.mxu1  ;;  %v2481_v15 = vpop.f32.mrf.mxu0 }
 0x3bd   :  { %v2205_v16 = vmul.f32 -1.442695, %v1055_v13  ;;  %v2207_v21 = vmul.f32 -1.442695, %v1064_v20 }
 0x3bf   :  { %2661 = vpow2.f32 %v2205_v16 }
 0x3c0   :  { %2663 = vpow2.f32 %v2207_v21  ;;  %v2220_v21 = vld [vmem:[%s3275_s0 + $0xa] sm:$0x3] }
 0x3c2   :  { %v1049_v17 = vpop.f32.mrf.mxu1 }
 0x3c3   :  { %v1050_v25 = vadd.f32 %v2903_v27, %v1049_v17 }
 0x3c4   :  { %v2492_v19 = vpop.f32.mrf.mxu1 }
 0x3cc   :  { %v2662_v22 = vpop.eup %2661 }
 0x3cd   :  { %v1059_v23 = vadd.f32 1.0, %v2662_v22  ;;  %v2664_v24 = vpop.eup %2663 }
 0x3ce   :  { %v1068_v30 = vadd.f32 1.0, %v2664_v24 }
 0x3cf   :  { %2665 = vrcp.f32 %v1059_v23 }
 0x3dc   :  { %v2666_v26 = vpop.eup %2665 }
 0x3dd   :  { %v1073_v29 = vmul.f32 %v2666_v26, %v1050_v25 }
 0x3df   :  { %v1074_v31 = vadd.f32 %v2208_v28, %v1073_v29 }
 0x3e1   :  { %2667 = vtanh.f32 %v1074_v31 }
 0x3e2   :  { %2669 = vrcp.f32 %v1068_v30  ;;  %v2222_v30 = vld [vmem:[%s3276_s1 + $0xa] sm:$0x3] }
 0x3ee   :  { %v2668_v32 = vpop.eup %2667 }
 0x3ef   :  { %v1076_v33 = vsub.f32 %v3021_v56, %v2668_v32  ;;  %v2670_v34 = vpop.eup %2669 }
 0x3f1   :  { %v1077_v35 = vmul.f32 %v2670_v34, %v1076_v33 }
 0x3f3   :  { %v3076_v36 = vadd.f32 %v2668_v32, %v1077_v35 }
 0x3f5   :  { %v1086_v37 = vrot.slane %v3076_v36, %v2909_v44  ;;  %2502 = vmatmul.mubr.msk.f32.vlgmr.msra.gmra.mxu0 %vm40_vm1, %v3076_v36  ;;  %2513 = vmatmul.mubr.msk.f32.vlgmr.msra.gmra.mxu1 %vm40_vm1, %v3076_v36 }
 0x3f6   :  { %2516 = vmatpush3.msra.mxu0 %v2839_v9  ;;  %2523 = vmatprep.mubr.msk.f32.mxu0 %vm2734_vm0, %v2733_v1 }
 0x3f7   :  { %v1087_v38 = vcombine.high %v1086_v37, %v1086_v37  ;;  %v1094_v39 = vrot.slane %v1086_v37, %v2909_v44  ;;  %2517 = vmatprep.subr.mxu0 %v2733_v1  ;;  %2527 = vmatpush3.msra.mxu1 %v2782_v0 }
 0x3f8   :  { %2518 = vmatpush3.msra.mxu0 %v2849_v10  ;;  %2528 = vmatprep.subr.mxu1 %v2733_v1 }
 0x3f9   :  { %v1101_v40 = vrot.slane %v1087_v38, %v2909_v44  ;;  %1104 = vst.msk [vmem:[#allocation2 + $0x3] sm:$0x1] %vm308_vm2, %v1094_v39  ;;  %2519 = vmatprep.subr.mxu0 %v2733_v1  ;;  %2529 = vmatpush3.msra.mxu1 %v2788_v2  ;;  %v2224_v39 = vld [vmem:[%s3277_s2 + $0xa] sm:$0x3] }
 0x3fa   :  { %2520 = vmatpush3.msra.mxu0 %v2857_v11  ;;  %2530 = vmatprep.subr.mxu1 %v2733_v1 }
 0x3fb   :  { %1105 = vst.msk [vmem:[#allocation2 + $0xb] sm:$0x1] %vm308_vm2, %v1101_v40  ;;  %2521 = vmatprep.subr.mxu0 %v2733_v1  ;;  %2531 = vmatpush3.msra.mxu1 %v2808_v5 }
 0x3fc   :  { %2522 = vmatpush3.msra.mxu0 %v2867_v12  ;;  %2532 = vmatprep.subr.mxu1 %v2733_v1 }
 0x3fd   :  { %2524 = vmatmul.mubr.msk.f32.vlgmr.msra.gmra.mxu0 %vm40_vm1, %v3076_v36  ;;  %2537 = vmatprep.subr.mxu0 %v2733_v1 }
 0x3fe   :  { %2538 = vmatpush3.msra.mxu0 %v2795_v3  ;;  %2533 = vmatpush3.msra.mxu1 %v2822_v7 }
 0x3ff   :  { %2539 = vmatprep.subr.mxu0 %v2733_v1  ;;  %2534 = vmatprep.mubr.msk.f32.mxu1 %vm2734_vm0, %v2733_v1 }
 0x400   :  { %2540 = vmatpush3.msra.mxu0 %v2802_v4  ;;  %2545 = vmatprep.mubr.msk.f32.mxu0 %vm2734_vm0, %v2733_v1 }
 0x401   :  { %2541 = vmatprep.subr.mxu0 %v2733_v1  ;;  %2548 = vmatprep.subr.mxu1 %v2733_v1 }
 0x402   :  { %2542 = vmatpush3.msra.mxu0 %v2816_v6 }
 0x403   :  { %2543 = vmatprep.subr.mxu0 %v2733_v1 }
 0x404   :  { %2544 = vmatpush3.msra.mxu0 %v2830_v8 }
 0x405   :  { %2559 = vmatprep.subr.mxu0 %v2733_v1 }
 0x4b5   :  { %v1174_v42 = vpop.f32.mrf.mxu0  ;;  %v1244_v43 = vpop.f32.mrf.mxu1 }
 0x4b6   :  { %v1320_v45 = vadd.f32 %v2212_v41, %v1174_v42  ;;  %v1329_v52 = vadd.f32 %v2214_v50, %v1244_v43 }
 0x4b7   :  { %v2503_v46 = vpop.f32.mrf.mxu0  ;;  %v2514_v47 = vpop.f32.mrf.mxu1 }
 0x4b8   :  { %v2213_v48 = vmul.f32 -1.442695, %v1320_v45  ;;  %v2215_v53 = vmul.f32 -1.442695, %v1329_v52 }
 0x4ba   :  { %2671 = vpow2.f32 %v2213_v48 }
 0x4bb   :  { %2673 = vpow2.f32 %v2215_v53 }
 0x4bd   :  { %v1314_v49 = vpop.f32.mrf.mxu0 }
 0x4be   :  { %v1315_v57 = vadd.f32 %v2903_v27, %v1314_v49 }
 0x4bf   :  { %v2525_v51 = vpop.f32.mrf.mxu0 }
 0x4c7   :  { %v2672_v54 = vpop.eup %2671 }
 0x4c8   :  { %v1324_v55 = vadd.f32 1.0, %v2672_v54  ;;  %v2674_v56 = vpop.eup %2673 }
 0x4c9   :  { %v1333_v61 = vadd.f32 1.0, %v2674_v56 }
 0x4ca   :  { %2675 = vrcp.f32 %v1324_v55 }
 0x4d7   :  { %v2676_v58 = vpop.eup %2675 }
 0x4d8   :  { %v1338_v60 = vmul.f32 %v2676_v58, %v1315_v57 }
 0x4da   :  { %v1339_v62 = vadd.f32 %v2216_v59, %v1338_v60 }
 0x4dc   :  { %2677 = vtanh.f32 %v1339_v62  ;;  %v2232_v62 = vld [vmem:[%s3277_s2 + $0xc] sm:$0x3] }
 0x4dd   :  { %2679 = vrcp.f32 %v1333_v61 }
 0x4e9   :  { %v2678_v63 = vpop.eup %2677 }
 0x4ea   :  { %v1341_v13 = vsub.f32 %v3076_v36, %v2678_v63  ;;  %v2680_v14 = vpop.eup %2679 }
 0x4ec   :  { %v1342_v15 = vmul.f32 %v2680_v14, %v1341_v13 }
 0x4ee   :  { %v3131_v16 = vadd.f32 %v2678_v63, %v1342_v15 }
 0x4f0   :  { %v1351_v17 = vrot.slane %v3131_v16, %v2909_v44  ;;  %2535 = vmatmul.mubr.msk.f32.vlgmr.msra.gmra.mxu1 %vm40_vm1, %v3131_v16  ;;  %2546 = vmatmul.mubr.msk.f32.vlgmr.msra.gmra.mxu0 %vm40_vm1, %v3131_v16 }
 0x4f1   :  { %2549 = vmatpush3.msra.mxu1 %v2839_v9  ;;  %2556 = vmatprep.mubr.msk.f32.mxu1 %vm2734_vm0, %v2733_v1 }
 0x4f2   :  { %v1352_v18 = vcombine.high %v1351_v17, %v1351_v17  ;;  %v1359_v19 = vrot.slane %v1351_v17, %v2909_v44  ;;  %2550 = vmatprep.subr.mxu1 %v2733_v1  ;;  %2560 = vmatpush3.msra.mxu0 %v2782_v0 }
 0x4f3   :  { %2551 = vmatpush3.msra.mxu1 %v2849_v10  ;;  %2561 = vmatprep.subr.mxu0 %v2733_v1 }
 0x4f4   :  { %v1366_v20 = vrot.slane %v1352_v18, %v2909_v44  ;;  %1369 = vst.msk [vmem:[#allocation2 + $0x4] sm:$0x1] %vm308_vm2, %v1359_v19  ;;  %2552 = vmatprep.subr.mxu1 %v2733_v1  ;;  %2562 = vmatpush3.msra.mxu0 %v2788_v2 }
 0x4f5   :  { %2553 = vmatpush3.msra.mxu1 %v2857_v11  ;;  %2563 = vmatprep.subr.mxu0 %v2733_v1 }
 0x4f6   :  { %1370 = vst.msk [vmem:[#allocation2 + $0xc] sm:$0x1] %vm308_vm2, %v1366_v20  ;;  %2554 = vmatprep.subr.mxu1 %v2733_v1  ;;  %2564 = vmatpush3.msra.mxu0 %v2808_v5 }
 0x4f7   :  { %2555 = vmatpush3.msra.mxu1 %v2867_v12  ;;  %2565 = vmatprep.subr.mxu0 %v2733_v1 }
 0x4f8   :  { %2557 = vmatmul.mubr.msk.f32.vlgmr.msra.gmra.mxu1 %vm40_vm1, %v3131_v16  ;;  %2570 = vmatprep.subr.mxu1 %v2733_v1 }
 0x4f9   :  { %2571 = vmatpush3.msra.mxu1 %v2795_v3  ;;  %2566 = vmatpush3.msra.mxu0 %v2822_v7 }
 0x4fa   :  { %2572 = vmatprep.subr.mxu1 %v2733_v1  ;;  %2567 = vmatprep.mubr.msk.f32.mxu0 %vm2734_vm0, %v2733_v1 }
 0x4fb   :  { %2573 = vmatpush3.msra.mxu1 %v2802_v4  ;;  %2578 = vmatprep.mubr.msk.f32.mxu1 %vm2734_vm0, %v2733_v1 }
 0x4fc   :  { %2574 = vmatprep.subr.mxu1 %v2733_v1  ;;  %2581 = vmatprep.subr.mxu0 %v2733_v1 }
 0x4fd   :  { %2575 = vmatpush3.msra.mxu1 %v2816_v6 }
 0x4fe   :  { %2576 = vmatprep.subr.mxu1 %v2733_v1 }
 0x4ff   :  { %2577 = vmatpush3.msra.mxu1 %v2830_v8 }
 0x500   :  { %2592 = vmatprep.subr.mxu1 %v2733_v1 }
 0x5b0   :  { %v1439_v22 = vpop.f32.mrf.mxu1  ;;  %v1509_v23 = vpop.f32.mrf.mxu0 }
 0x5b1   :  { %v1585_v24 = vadd.f32 %v2220_v21, %v1439_v22  ;;  %v1594_v32 = vadd.f32 %v2222_v30, %v1509_v23 }
 0x5b2   :  { %v2536_v25 = vpop.f32.mrf.mxu1  ;;  %v2547_v26 = vpop.f32.mrf.mxu0 }
 0x5b3   :  { %v2221_v28 = vmul.f32 -1.442695, %v1585_v24  ;;  %v2223_v33 = vmul.f32 -1.442695, %v1594_v32 }
 0x5b5   :  { %2681 = vpow2.f32 %v2221_v28 }
 0x5b6   :  { %2683 = vpow2.f32 %v2223_v33 }
 0x5b8   :  { %v1579_v29 = vpop.f32.mrf.mxu1 }
 0x5b9   :  { %v1580_v37 = vadd.f32 %v2903_v27, %v1579_v29 }
 0x5ba   :  { %v2558_v31 = vpop.f32.mrf.mxu1 }
 0x5c2   :  { %v2682_v34 = vpop.eup %2681 }
 0x5c3   :  { %v1589_v35 = vadd.f32 1.0, %v2682_v34  ;;  %v2684_v36 = vpop.eup %2683 }
 0x5c4   :  { %v1598_v41 = vadd.f32 1.0, %v2684_v36 }
 0x5c5   :  { %2685 = vrcp.f32 %v1589_v35 }
 0x5d2   :  { %v2686_v38 = vpop.eup %2685 }
 0x5d3   :  { %v1603_v40 = vmul.f32 %v2686_v38, %v1580_v37  ;;  %v2240_v37 = vld [vmem:[%s3277_s2 + $0xe] sm:$0x3] }
 0x5d5   :  { %v1604_v42 = vadd.f32 %v2224_v39, %v1603_v40 }
 0x5d7   :  { %2687 = vtanh.f32 %v1604_v42 }
 0x5d8   :  { %2689 = vrcp.f32 %v1598_v41 }
 0x5e4   :  { %v2688_v43 = vpop.eup %2687 }
 0x5e5   :  { %v1606_v45 = vsub.f32 %v3131_v16, %v2688_v43  ;;  %v2690_v46 = vpop.eup %2689 }
 0x5e7   :  { %v1607_v47 = vmul.f32 %v2690_v46, %v1606_v45 }
 0x5e9   :  { %v3186_v48 = vadd.f32 %v2688_v43, %v1607_v47 }
 0x5eb   :  { %v1616_v49 = vrot.slane %v3186_v48, %v2909_v44  ;;  %2568 = vmatmul.mubr.msk.f32.vlgmr.msra.gmra.mxu0 %vm40_vm1, %v3186_v48  ;;  %2579 = vmatmul.mubr.msk.f32.vlgmr.msra.gmra.mxu1 %vm40_vm1, %v3186_v48 }
 0x5ec   :  { %2582 = vmatpush3.msra.mxu0 %v2839_v9  ;;  %2589 = vmatprep.mubr.msk.f32.mxu0 %vm2734_vm0, %v2733_v1 }
 0x5ed   :  { %v1617_v50 = vcombine.high %v1616_v49, %v1616_v49  ;;  %v1624_v51 = vrot.slane %v1616_v49, %v2909_v44  ;;  %2583 = vmatprep.subr.mxu0 %v2733_v1  ;;  %2593 = vmatpush3.msra.mxu1 %v2782_v0  ;;  %v2228_v0 = vld [vmem:[%s3275_s0 + $0xc] sm:$0x3] }
 0x5ee   :  { %2584 = vmatpush3.msra.mxu0 %v2849_v10  ;;  %2594 = vmatprep.subr.mxu1 %v2733_v1 }
 0x5ef   :  { %v1631_v52 = vrot.slane %v1617_v50, %v2909_v44  ;;  %1634 = vst.msk [vmem:[#allocation2 + $0x5] sm:$0x1] %vm308_vm2, %v1624_v51  ;;  %2585 = vmatprep.subr.mxu0 %v2733_v1  ;;  %2595 = vmatpush3.msra.mxu1 %v2788_v2 }
 0x5f0   :  { %2586 = vmatpush3.msra.mxu0 %v2857_v11  ;;  %2596 = vmatprep.subr.mxu1 %v2733_v1 }
 0x5f1   :  { %1635 = vst.msk [vmem:[#allocation2 + $0xd] sm:$0x1] %vm308_vm2, %v1631_v52  ;;  %2587 = vmatprep.subr.mxu0 %v2733_v1  ;;  %2597 = vmatpush3.msra.mxu1 %v2808_v5 }
 0x5f2   :  { %2588 = vmatpush3.msra.mxu0 %v2867_v12  ;;  %2598 = vmatprep.subr.mxu1 %v2733_v1 }
 0x5f3   :  { %2590 = vmatmul.mubr.msk.f32.vlgmr.msra.gmra.mxu0 %vm40_vm1, %v3186_v48  ;;  %2603 = vmatprep.subr.mxu0 %v2733_v1 }
 0x5f4   :  { %2604 = vmatpush3.msra.mxu0 %v2795_v3  ;;  %2599 = vmatpush3.msra.mxu1 %v2822_v7 }
 0x5f5   :  { %2605 = vmatprep.subr.mxu0 %v2733_v1  ;;  %2600 = vmatprep.mubr.msk.f32.mxu1 %vm2734_vm0, %v2733_v1 }
 0x5f6   :  { %2606 = vmatpush3.msra.mxu0 %v2802_v4  ;;  %2611 = vmatprep.mubr.msk.f32.mxu0 %vm2734_vm0, %v2733_v1 }
 0x5f7   :  { %2607 = vmatprep.subr.mxu0 %v2733_v1  ;;  %2614 = vmatprep.subr.mxu1 %v2733_v1 }
 0x5f8   :  { %2608 = vmatpush3.msra.mxu0 %v2816_v6  ;;  %v2230_v6 = vld [vmem:[%s3276_s1 + $0xc] sm:$0x3] }
 0x5f9   :  { %2609 = vmatprep.subr.mxu0 %v2733_v1 }
 0x5fa   :  { %2610 = vmatpush3.msra.mxu0 %v2830_v8 }
 0x6ab   :  { %v1704_v2 = vpop.f32.mrf.mxu0  ;;  %v1774_v3 = vpop.f32.mrf.mxu1 }
 0x6ac   :  { %v1850_v4 = vadd.f32 %v2228_v0, %v1704_v2  ;;  %v1859_v56 = vadd.f32 %v2230_v6, %v1774_v3 }
 0x6ad   :  { %v2569_v5 = vpop.f32.mrf.mxu0  ;;  %v2580_v7 = vpop.f32.mrf.mxu1 }
 0x6ae   :  { %v2229_v53 = vmul.f32 -1.442695, %v1850_v4  ;;  %v2231_v57 = vmul.f32 -1.442695, %v1859_v56 }
 0x6b0   :  { %2691 = vpow2.f32 %v2229_v53 }
 0x6b1   :  { %2693 = vpow2.f32 %v2231_v57 }
 0x6b3   :  { %v1844_v54 = vpop.f32.mrf.mxu0 }
 0x6b4   :  { %v1845_v60 = vadd.f32 %v2903_v27, %v1844_v54 }
 0x6b5   :  { %v2591_v55 = vpop.f32.mrf.mxu0 }
 0x6bd   :  { %v2692_v8 = vpop.eup %2691 }
 0x6be   :  { %v1854_v58 = vadd.f32 1.0, %v2692_v8  ;;  %v2694_v59 = vpop.eup %2693 }
 0x6bf   :  { %v1863_v13 = vadd.f32 1.0, %v2694_v59 }
 0x6c0   :  { %2695 = vrcp.f32 %v1854_v58 }
 0x6cd   :  { %v2696_v61 = vpop.eup %2695 }
 0x6ce   :  { %v1868_v63 = vmul.f32 %v2696_v61, %v1845_v60 }
 0x6d0   :  { %v1869_v14 = vadd.f32 %v2232_v62, %v1868_v63 }
 0x6d2   :  { %2697 = vtanh.f32 %v1869_v14 }
 0x6d3   :  { %2699 = vrcp.f32 %v1863_v13 }
 0x6df   :  { %v2698_v15 = vpop.eup %2697 }
 0x6e0   :  { %v1871_v16 = vsub.f32 %v3186_v48, %v2698_v15  ;;  %v2700_v17 = vpop.eup %2699 }
 0x6e2   :  { %v1872_v18 = vmul.f32 %v2700_v17, %v1871_v16 }
 0x6e4   :  { %v1873_v19 = vadd.f32 %v2698_v15, %v1872_v18 }
 0x6e6   :  { %v1881_v20 = vrot.slane %v1873_v19, %v2909_v44  ;;  %2601 = vmatmul.mubr.msk.f32.vlgmr.msra.gmra.mxu1 %vm40_vm1, %v1873_v19  ;;  %2612 = vmatmul.mubr.msk.f32.vlgmr.msra.gmra.mxu0 %vm40_vm1, %v1873_v19 }
 0x6e7   :  { %2615 = vmatpush3.msra.mxu1 %v2839_v9  ;;  %2622 = vmatprep.mubr.msk.f32.mxu1 %vm2734_vm0, %v2733_v1  ;;  %v2236_v9 = vld [vmem:[%s3275_s0 + $0xe] sm:$0x3] }
 0x6e8   :  { %v1882_v21 = vcombine.high %v1881_v20, %v1881_v20  ;;  %v1889_v22 = vrot.slane %v1881_v20, %v2909_v44  ;;  %2616 = vmatprep.subr.mxu1 %v2733_v1 }
 0x6e9   :  { %2617 = vmatpush3.msra.mxu1 %v2849_v10 }
 0x6ea   :  { %v1896_v23 = vrot.slane %v1882_v21, %v2909_v44  ;;  %1899 = vst.msk [vmem:[#allocation2 + $0x6] sm:$0x1] %vm308_vm2, %v1889_v22  ;;  %2618 = vmatprep.subr.mxu1 %v2733_v1 }
 0x6eb   :  { %2619 = vmatpush3.msra.mxu1 %v2857_v11 }
 0x6ec   :  { %1900 = vst.msk [vmem:[#allocation2 + $0xe] sm:$0x1] %vm308_vm2, %v1896_v23  ;;  %2620 = vmatprep.subr.mxu1 %v2733_v1  ;;  %v2238_v1 = vld [vmem:[%s3276_s1 + $0xe] sm:$0x3]  ;;  %s2736_s1 = smov [#allocation2]  }
 0x6ed   :  { %2621 = vmatpush3.msra.mxu1 %v2867_v12  ;;  %s2171_s18 = sshll.u32 %s2736_s1, 4  ;;  %s2172_s18 = int_to_ptr.vmem [resolvable:$true] %s2171_s18 }
 0x6ee   :  { %2623 = vmatmul.mubr.msk.f32.vlgmr.msra.gmra.mxu1 %vm40_vm1, %v1873_v19  ;;  %s2711_s2 = scalar_lea.vmem %s2172_s18, 256  ;;  %p2716_p1 = scmp.lt.s32.totalorder %s2172_s18, %s2172_s18 }
 0x6ef   :  { %p2712_p0 = scmp.ne.s32.totalorder %s2172_s18, %s2711_s2  ;;  %p2717_p2 = scmp.lt.s32.totalorder %s2711_s2, %s2711_s2 }
 0x6f1   :  { %p2718_p3 = por %p2717_p2, %p2716_p1 }
 0x6f3   :  { %p2719_p4 = pnand %p2718_p3, %p2712_p0 }
 0x7a6   :  { %v1969_v10 = vpop.f32.mrf.mxu1  ;;  %v2039_v24 = vpop.f32.mrf.mxu0 }
 0x7a7   :  { %v2115_v25 = vadd.f32 %v2236_v9, %v1969_v10  ;;  %v2124_v12 = vadd.f32 %v2238_v1, %v2039_v24 }
 0x7a8   :  { %v2602_v26 = vpop.f32.mrf.mxu1  ;;  %v2613_v28 = vpop.f32.mrf.mxu0 }
 0x7a9   :  { %v2237_v29 = vmul.f32 -1.442695, %v2115_v25  ;;  %v2239_v31 = vmul.f32 -1.442695, %v2124_v12 }
 0x7ab   :  { %2701 = vpow2.f32 %v2237_v29 }
 0x7ac   :  { %2703 = vpow2.f32 %v2239_v31 }
 0x7ae   :  { %v2109_v11 = vpop.f32.mrf.mxu1 }
 0x7af   :  { %v2110_v35 = vadd.f32 %v2903_v27, %v2109_v11 }
 0x7b0   :  { %v2624_v30 = vpop.f32.mrf.mxu1 }
 0x7b8   :  { %v2702_v32 = vpop.eup %2701 }
 0x7b9   :  { %v2119_v33 = vadd.f32 1.0, %v2702_v32  ;;  %v2704_v34 = vpop.eup %2703 }
 0x7ba   :  { %v2128_v39 = vadd.f32 1.0, %v2704_v34 }
 0x7bb   :  { %2705 = vrcp.f32 %v2119_v33 }
 0x7c8   :  { %v2706_v36 = vpop.eup %2705 }
 0x7c9   :  { %v2133_v38 = vmul.f32 %v2706_v36, %v2110_v35 }
 0x7cb   :  { %v2134_v40 = vadd.f32 %v2240_v37, %v2133_v38 }
 0x7cd   :  { %2707 = vtanh.f32 %v2134_v40 }
 0x7ce   :  { %2709 = vrcp.f32 %v2128_v39 }
 0x7da   :  { %v2708_v41 = vpop.eup %2707 }
 0x7db   :  { %v2136_v42 = vsub.f32 %v1873_v19, %v2708_v41  ;;  %v2710_v43 = vpop.eup %2709 }
 0x7dd   :  { %v2137_v45 = vmul.f32 %v2710_v43, %v2136_v42 }
 0x7df   :  { %v2138_v46 = vadd.f32 %v2708_v41, %v2137_v45 }
 0x7e1   :  { %v2146_v47 = vrot.slane %v2138_v46, %v2909_v44 }
 0x7e3   :  { %v2147_v27 = vcombine.high %v2146_v47, %v2146_v47  ;;  %v2154_v48 = vrot.slane %v2146_v47, %v2909_v44 }
 0x7e5   :  { %v2161_v49 = vrot.slane %v2147_v27, %v2909_v44  ;;  %2164 = vst.msk [vmem:[#allocation2 + $0x7] sm:$0x1] %vm308_vm2, %v2154_v48 }
 0x7e7   :  { %2165 = vst.msk [vmem:[#allocation2 + $0xf] sm:$0x1] %vm308_vm2, %v2161_v49 }
 0x7e8   :  { %2722 = shalt.err (!%p2719_p4)
}
 0x7e9   :  { %s2737_s19 = smov 128   ;;  %s2738_s20 = smov 8  }
 0x7ea   :  { %2177 = dma.vmem_to_hbm [thread:$0]  %s2172_s18, 256, %s3282_s7, [#allocation3], %s2737_s19, %s2737_s19, %s2738_s20  }
 0x7eb   :  { %2731 = dma.done.wait [#allocation3], 256  }
 0x7ec   :  { %2732 = vsyncadd [#allocation3], 4294967040 }
 0x7ed   :  { %2181 = vsyncpa [#allocation3], 1 }

</bundles_post_ra>
